<compile_context>
chip_gen: v7x
topology: tpu7x:2x2x1
jax: 0.10.0
libtpu: 0.0.40
codegen_flags: <defaults>
</compile_context>

<pallas_src>
import functools

import jax
import jax.numpy as jnp
from jax.experimental import pallas as pl
from jax.experimental.pallas import tpu as pltpu


def _head_kernel(x_ref, w1_ref, b1_ref, w2_ref, b2_ref, o_ref):
    # x_ref : (TB, H)  input dtype  CLS-token features (one batch tile)
    # w1_ref: (H, H)   bf16         dense weight, (in, out) layout
    # b1_ref: (1, H)   f32          dense bias
    # w2_ref: (H, LP)  bf16         out_proj weight, (in, out), lane-padded
    # b2_ref: (1, LP)  f32          out_proj bias, lane-padded
    # o_ref : (TB, LP) f32          lane-dense logits
    x = x_ref[...].astype(w1_ref.dtype)                         # bf16 for the MXU
    h = jnp.dot(x, w1_ref[...], preferred_element_type=jnp.float32)
    h = jnp.maximum(h + b1_ref[...], 0.0)                       # bias + ReLU in f32 (VPU)
    out = jnp.dot(h.astype(w2_ref.dtype), w2_ref[...],
                  preferred_element_type=jnp.float32)
    o_ref[...] = (out + b2_ref[...]).astype(o_ref.dtype)        # f32 bias, f32 store


def prepare_head_params(w_dense, b_dense, w_out, b_out,
                        *, compute_dtype=jnp.bfloat16, lane_pad=128):
    """One-time (model-load) weight preparation.

    w_dense: (H, H) PyTorch (out, in) layout, b_dense: (H,)
    w_out  : (L, H) PyTorch (out, in) layout, b_out : (L,)
    Returns (w1, b1, w2, b2):
      w1 (H, H) bf16, b1 (1, H) f32, w2 (H, LP) bf16, b2 (1, LP) f32,
    with LP = round_up(L, 128) so the kernel's output stays lane-dense
    (unmasked full-lane stores); do NOT pad wider than 128 for small L.
    """
    H = w_dense.shape[0]
    L = w_out.shape[0]
    LP = lane_pad * pl.cdiv(L, lane_pad)

    w1 = jnp.asarray(w_dense.T, dtype=compute_dtype)             # (H, H) (in, out)
    b1 = jnp.asarray(b_dense, dtype=jnp.float32).reshape(1, H)

    w2 = jnp.zeros((H, LP), dtype=compute_dtype)
    w2 = w2.at[:, :L].set(jnp.asarray(w_out.T, dtype=compute_dtype))
    b2 = jnp.zeros((1, LP), dtype=jnp.float32)
    b2 = b2.at[:, :L].set(jnp.asarray(b_out, dtype=jnp.float32).reshape(1, L))
    return w1, b1, w2, b2


def _round_up(x, m):
    return m * pl.cdiv(x, m)


def deberta_classification_head(hidden_states, w1, b1, w2, b2,
                                *, num_labels, batch_tile=512):
    """hidden_states: (B, S, H); prepared params from prepare_head_params.

    Returns logits (B, num_labels) in float32 (the accumulation precision).
    """
    B, S, H = hidden_states.shape
    LP = w2.shape[1]
    x_itemsize = hidden_states.dtype.itemsize

    # --- batch tile selection -------------------------------------------------
    #  * big tiles amortize the ~0.35 us/step pipeline overhead,
    #  * >= 2 grid steps whenever B >= 256 so the "parallel" batch axis is
    #    actually split across v7x's two TensorCores,
    #  * tiles are multiples of 128 (MXU M-granularity on all generations).
    if B < 256:
        tb = B                                                   # one full block
    else:
        tb = min(batch_tile, _round_up(pl.cdiv(B, 2), 128))

    # --- VMEM budget (default double-buffering on every block) ----------------
    resident = 2 * (w1.size * w1.dtype.itemsize + w2.size * w2.dtype.itemsize
                    + b1.size * 4 + b2.size * 4)

    def vmem_need(t):
        return resident + 2 * t * (H * x_itemsize + LP * 4)

    VMEM_CAP = 64 * 1024 * 1024          # v7x physical VMEM (v5e/v6e have 128 MiB)
    while tb > 128 and vmem_need(tb) > VMEM_CAP:
        tb -= 128
    vmem_limit = int(min(max(vmem_need(tb) + (2 << 20), 32 * 1024 * 1024), VMEM_CAP))

    grid = (pl.cdiv(B, tb),)

    # --- CLS-token slice fused into the BlockSpec ------------------------------
    if H % 128 == 0:
        # View (B, S, H) as (B, S*H) (free, contiguous reshape); the first H
        # lanes of each row are exactly hidden_states[:, 0, :], so the x tile
        # DMA reads only tb*H elements per step — no (B, H) HBM round trip.
        x_in = hidden_states.reshape(B, S * H)
    else:
        # Fallback for non-lane-aligned hidden sizes (not the DeBERTa case).
        x_in = hidden_states[:, 0, :]
    x_spec = pl.BlockSpec((tb, H), lambda i: (i, 0))             # x: streamed over B

    logits_padded = pl.pallas_call(
        _head_kernel,
        out_shape=jax.ShapeDtypeStruct((B, LP), jnp.float32),
        grid_spec=pltpu.PrefetchScalarGridSpec(
            num_scalar_prefetch=0,
            grid=grid,
            in_specs=[
                x_spec,
                pl.BlockSpec((H, H), lambda i: (0, 0)),          # w1: resident
                pl.BlockSpec((1, H), lambda i: (0, 0)),          # b1: resident
                pl.BlockSpec((H, LP), lambda i: (0, 0)),         # w2: resident
                pl.BlockSpec((1, LP), lambda i: (0, 0)),         # b2: resident
            ],
            out_specs=pl.BlockSpec((tb, LP), lambda i: (i, 0)),  # lane-dense out
        ),
        compiler_params=pltpu.CompilerParams(
            dimension_semantics=("parallel",),                   # shard B over TCs
            vmem_limit_bytes=vmem_limit,
        ),
    )(x_in, w1, b1, w2, b2)

    return logits_padded[:, :num_labels]


def _reference(hidden_states, w1, b1, w2, b2, num_labels):
    """Plain-JAX reference with the same prepared bf16 params / f32 accumulation."""
    x = hidden_states[:, 0, :].astype(jnp.bfloat16)
    h = jnp.dot(x, w1, preferred_element_type=jnp.float32) + b1
    h = jnp.maximum(h, 0.0).astype(jnp.bfloat16)
    out = jnp.dot(h, w2, preferred_element_type=jnp.float32) + b2
    return out[:, :num_labels]


if __name__ == "__main__":
    def run_case(B, S, H, L, x_dtype):
        key = jax.random.PRNGKey(0)
        k_x, k_w1, k_b1, k_w2, k_b2 = jax.random.split(key, 5)

        hidden_states = jax.random.normal(k_x, (B, S, H), jnp.float32).astype(x_dtype)
        # Deterministic synthetic parameters (shapes from nn.Linear in __init__).
        w_dense = jax.random.normal(k_w1, (H, H), jnp.float32) * 0.02
        b_dense = jax.random.normal(k_b1, (H,), jnp.float32) * 0.02
        w_out = jax.random.normal(k_w2, (L, H), jnp.float32) * 0.02
        b_out = jax.random.normal(k_b2, (L,), jnp.float32) * 0.02

        # One-time weight prep (transpose / bf16 cast / lane-pad) outside the jit.
        w1, b1, w2, b2 = prepare_head_params(w_dense, b_dense, w_out, b_out)

        fwd = jax.jit(functools.partial(deberta_classification_head, num_labels=L))
        logits = jax.block_until_ready(fwd(hidden_states, w1, b1, w2, b2))

        ref = _reference(hidden_states, w1, b1, w2, b2, L)
        assert logits.shape == (B, L), (logits.shape, (B, L))
        assert logits.dtype == jnp.float32
        err = jnp.max(jnp.abs(logits - ref))
        assert jnp.allclose(logits, ref, atol=5e-4, rtol=1e-2), f"max abs diff = {err}"

    # Primary small config (fused CLS-slice path, single batch tile).
    run_case(B=2, S=8, H=128, L=4, x_dtype=jnp.float32)
    # Multi-step grid (2 parallel steps), partial last batch tile, bf16 activations.
    run_case(B=260, S=8, H=128, L=4, x_dtype=jnp.bfloat16)
    # Non-lane-aligned hidden size exercises the wrapper-slice fallback path.
    run_case(B=2, S=8, H=32, L=4, x_dtype=jnp.float32)

    print("KERNEL_OK")
</pallas_src>

<mosaic_0001>
module attributes {stable_mosaic.version = 11 : i64} {
  func.func @_head_kernel(%arg0: i32, %arg1: memref<2x128xf32, #tpu.memory_space<vmem>>, %arg2: memref<128x128xbf16, #tpu.memory_space<vmem>>, %arg3: memref<1x128xf32, #tpu.memory_space<vmem>>, %arg4: memref<128x128xbf16, #tpu.memory_space<vmem>>, %arg5: memref<1x128xf32, #tpu.memory_space<vmem>>, %arg6: memref<2x128xf32, #tpu.memory_space<vmem>>) attributes {dimension_semantics = [#tpu.dimension_semantics<parallel>], iteration_bounds = array<i64: 1>, scalar_prefetch = 0 : i64, scratch_operands = 0 : i64, tpu.core_type = #tpu.core_type<tc>, window_params = [{transform_indices = @transform_0, window_bounds = array<i64: 2, 128>}, {pipeline_mode = #tpu.pipeline_mode<synchronous>, transform_indices = @transform_1, window_bounds = array<i64: 128, 128>}, {pipeline_mode = #tpu.pipeline_mode<synchronous>, transform_indices = @transform_2, window_bounds = array<i64: 1, 128>}, {pipeline_mode = #tpu.pipeline_mode<synchronous>, transform_indices = @transform_3, window_bounds = array<i64: 128, 128>}, {pipeline_mode = #tpu.pipeline_mode<synchronous>, transform_indices = @transform_4, window_bounds = array<i64: 1, 128>}, {transform_indices = @transform_5, window_bounds = array<i64: 2, 128>}]} {
    %c0 = arith.constant 0 : index
    %c0_0 = arith.constant 0 : index
    %0 = vector.load %arg1[%c0, %c0_0] : memref<2x128xf32, #tpu.memory_space<vmem>>, vector<2x128xf32>
    %1 = arith.truncf %0 : vector<2x128xf32> to vector<2x128xbf16>
    %c0_1 = arith.constant 0 : index
    %c0_2 = arith.constant 0 : index
    %2 = vector.load %arg2[%c0_1, %c0_2] : memref<128x128xbf16, #tpu.memory_space<vmem>>, vector<128x128xbf16>
    %cst = arith.constant dense<0.000000e+00> : vector<2x128xf32>
    %3 = tpu.matmul %1, %2, %cst {dimension_numbers = #tpu.dot_dimension_numbers<[1], [0], [0], [1], [0, 0, 1, 1], [], []>} : vector<2x128xbf16>, vector<128x128xbf16>, vector<2x128xf32> -> vector<2x128xf32>
    %c0_3 = arith.constant 0 : index
    %c0_4 = arith.constant 0 : index
    %4 = vector.load %arg3[%c0_3, %c0_4] : memref<1x128xf32, #tpu.memory_space<vmem>>, vector<1x128xf32>
    %5 = vector.broadcast %4 : vector<1x128xf32> to vector<2x128xf32>
    %6 = arith.addf %3, %5 : vector<2x128xf32>
    %cst_5 = arith.constant 0.000000e+00 : f32
    %7 = vector.broadcast %cst_5 : f32 to vector<2x128xf32>
    %8 = arith.maximumf %6, %7 : vector<2x128xf32>
    %9 = arith.truncf %8 : vector<2x128xf32> to vector<2x128xbf16>
    %c0_6 = arith.constant 0 : index
    %c0_7 = arith.constant 0 : index
    %10 = vector.load %arg4[%c0_6, %c0_7] : memref<128x128xbf16, #tpu.memory_space<vmem>>, vector<128x128xbf16>
    %cst_8 = arith.constant dense<0.000000e+00> : vector<2x128xf32>
    %11 = tpu.matmul %9, %10, %cst_8 {dimension_numbers = #tpu.dot_dimension_numbers<[1], [0], [0], [1], [0, 0, 1, 1], [], []>} : vector<2x128xbf16>, vector<128x128xbf16>, vector<2x128xf32> -> vector<2x128xf32>
    %c0_9 = arith.constant 0 : index
    %c0_10 = arith.constant 0 : index
    %12 = vector.load %arg5[%c0_9, %c0_10] : memref<1x128xf32, #tpu.memory_space<vmem>>, vector<1x128xf32>
    %13 = vector.broadcast %12 : vector<1x128xf32> to vector<2x128xf32>
    %14 = arith.addf %11, %13 : vector<2x128xf32>
    %c0_11 = arith.constant 0 : index
    %c0_12 = arith.constant 0 : index
    %15 = vector.load %arg6[%c0_11, %c0_12] : memref<2x128xf32, #tpu.memory_space<vmem>>, vector<2x128xf32>
    tpu.vector_store %arg6[%c0_11, %c0_12], %14 {strides = array<i32>} : memref<2x128xf32, #tpu.memory_space<vmem>>, vector<2x128xf32>,
    return
  }
  func.func @transform_0(%arg0: i32) -> (i32, i32) {
    %c0_i32 = arith.constant 0 : i32
    %c0_i32_0 = arith.constant 0 : i32
    return %arg0, %c0_i32 : i32, i32
  }
  func.func @transform_1(%arg0: i32) -> (i32, i32) {
    %c0_i32 = arith.constant 0 : i32
    %c0_i32_0 = arith.constant 0 : i32
    %c0_i32_1 = arith.constant 0 : i32
    return %c0_i32, %c0_i32_0 : i32, i32
  }
  func.func @transform_2(%arg0: i32) -> (i32, i32) {
    %c0_i32 = arith.constant 0 : i32
    %c0_i32_0 = arith.constant 0 : i32
    %c0_i32_1 = arith.constant 0 : i32
    return %c0_i32, %c0_i32_0 : i32, i32
  }
  func.func @transform_3(%arg0: i32) -> (i32, i32) {
    %c0_i32 = arith.constant 0 : i32
    %c0_i32_0 = arith.constant 0 : i32
    %c0_i32_1 = arith.constant 0 : i32
    return %c0_i32, %c0_i32_0 : i32, i32
  }
  func.func @transform_4(%arg0: i32) -> (i32, i32) {
    %c0_i32 = arith.constant 0 : i32
    %c0_i32_0 = arith.constant 0 : i32
    %c0_i32_1 = arith.constant 0 : i32
    return %c0_i32, %c0_i32_0 : i32, i32
  }
  func.func @transform_5(%arg0: i32) -> (i32, i32) {
    %c0_i32 = arith.constant 0 : i32
    %c0_i32_0 = arith.constant 0 : i32
    return %arg0, %c0_i32 : i32, i32
  }
}

</mosaic_0001>

<bundles_post_ra>
// kernel: deberta_classification_head.1
= control target key start
LH: loop header
LB: loop body
LE: loop exit
PB: predicated region body
PF: predicated region fallthrough
CT: control target
= control target key end

     0   :  { %10 = vsyncpa [#allocation3], 0  ;;  %s546_s0 = inlined_call_operand.vmem [shape: f32[2,1024], index: 0, kind: input, shape index: {}]   ;;  %s547_s1 = inlined_call_operand.hbm [shape: bf16[128,128], index: 1, kind: input, shape index: {}]   ;;  %s548_s2 = inlined_call_operand.vmem [shape: f32[1,128], index: 2, kind: input, shape index: {}]   ;;  %s549_s3 = inlined_call_operand.hbm [shape: bf16[128,128], index: 3, kind: input, shape index: {}]   ;;  %s550_s4 = inlined_call_operand.vmem [shape: f32[1,128], index: 4, kind: input, shape index: {}]   ;;  %s551_s5 = inlined_call_operand.hbm [shape: f32[2,128], index: 5, kind: output, shape index: {}]  }
   0x1   :  { %11 = vsyncpa [#allocation6], 0 }
   0x2   :  { %12 = vsyncpa [#allocation4], 0  ;;  %s464_s18 = smov [#allocation2]   ;;  %s392_s22 = scalar_lea.hbm %s547_s1, 1024 }
   0x3   :  { %s20_s19 = sshll.u32 %s464_s18, 4  ;;  %p393_p0 = scmp.ne.s32.totalorder %s547_s1, %s392_s22  ;;  %s21_s19 = int_to_ptr.vmem [resolvable:$true] %s20_s19 }
   0x4   :  { %p396_p1 = scmp.lt.u32.totalorder %s392_s22, %s547_s1 }
   0x6   :  { %p398_p2 = pnand %p396_p1, %p393_p0 }
   0x8   :  { %401 = shalt.err (!%p398_p2)
}
   0x9   :  { %s402_s27 = scalar_lea.vmem %s21_s19, 1024  ;;  %p407_p4 = scmp.lt.s32.totalorder %s21_s19, %s21_s19 }
   0xa   :  { %p403_p3 = scmp.ne.s32.totalorder %s21_s19, %s402_s27  ;;  %p408_p5 = scmp.lt.s32.totalorder %s402_s27, %s402_s27 }
   0xc   :  { %p409_p6 = por %p408_p5, %p407_p4 }
   0xe   :  { %p410_p7 = pnand %p409_p6, %p403_p3 }
  0x10   :  { %413 = shalt.err (!%p410_p7)
}
  0x11   :  { %s465_s28 = smov 64   ;;  %s466_s29 = smov 4  }
  0x12   :  { %26 = dma.hbm_to_vmem [thread:$0]  %s547_s1, 1024, %s21_s19, [#allocation3], %s465_s28, %s465_s28, %s466_s29  }
  0x13   :  { %s467_s7 = smov [#allocation5]   ;;  %s414_s11 = scalar_lea.hbm %s549_s3, 1024 }
  0x14   :  { %s34_s8 = sshll.u32 %s467_s7, 4  ;;  %p415_p8 = scmp.ne.s32.totalorder %s549_s3, %s414_s11  ;;  %s35_s8 = int_to_ptr.vmem [resolvable:$true] %s34_s8 }
  0x15   :  { %p418_p9 = scmp.lt.u32.totalorder %s414_s11, %s549_s3 }
  0x17   :  { %p420_p10 = pnand %p418_p9, %p415_p8 }
  0x19   :  { %423 = shalt.err (!%p420_p10)
}
  0x1a   :  { %s424_s16 = scalar_lea.vmem %s35_s8, 1024  ;;  %p429_p12 = scmp.lt.s32.totalorder %s35_s8, %s35_s8 }
  0x1b   :  { %p425_p11 = scmp.ne.s32.totalorder %s35_s8, %s424_s16  ;;  %p430_p13 = scmp.lt.s32.totalorder %s424_s16, %s424_s16 }
  0x1d   :  { %p431_p0 = por %p430_p13, %p429_p12 }
  0x1f   :  { %p432_p1 = pnand %p431_p0, %p425_p11 }
  0x21   :  { %435 = shalt.err (!%p432_p1)
}
  0x22   :  { %40 = dma.hbm_to_vmem [thread:$0]  %s549_s3, 1024, %s35_s8, [#allocation6], %s465_s28, %s465_s28, %s466_s29  }
  0x23   :  { %458 = dma.done.wait [#allocation3], 1024  }
  0x24   :  { %459 = vsyncadd [#allocation3], 4294966272 }
  0x25   :  { %460 = dma.done.wait [#allocation6], 1024  }
  0x26   :  { %461 = vsyncadd [#allocation6], 4294966272  ;;  %v468_v0 = vmov 0.0   ;;  %vm469_vm0 = vmmov 0   ;;  %v376_v1 = vld [vmem:[#allocation2] sm:$0xff]   ;;  %v377_v2 = vld [vmem:[#allocation2 + $0x8] sm:$0xff]  }
  0x27   :  { %329 = vmatprep.subr.bf16.mxu0 %v468_v0  ;;  %345 = vmatprep.mubr.msk.bf16.mxu0 %vm469_vm0, %v468_v0  ;;  %v378_v3 = vld [vmem:[#allocation2 + $0x10] sm:$0xff]   ;;  %v384_v4 = vld [vmem:[#allocation5] sm:$0xff]   ;;  %v379_v5 = vld [vmem:[#allocation2 + $0x18] sm:$0xff]   ;;  %s470_s22 = smov [#allocation7]  }
  0x28   :  { %349 = vmatprep.subr.bf16.mxu1 %v468_v0  ;;  %365 = vmatprep.mubr.msk.bf16.mxu1 %vm469_vm0, %v468_v0  ;;  %v385_v6 = vld [vmem:[#allocation5 + $0x8] sm:$0xff]   ;;  %v380_v7 = vld [vmem:[#allocation2 + $0x20] sm:$0xff]   ;;  %v386_v8 = vld [vmem:[#allocation5 + $0x10] sm:$0xff]   ;;  %s283_s23 = sshll.u32 %s470_s22, 4  ;;  %s284_s23 = int_to_ptr.vmem [resolvable:$true] %s283_s23 }
  0x29   :  { %330 = vmatpush3.bf16.msra.mxu0 %v376_v1  ;;  %350 = vmatpush3.bf16.msra.mxu1 %v384_v4  ;;  %v381_v9 = vld [vmem:[#allocation2 + $0x28] sm:$0xff]   ;;  %v387_v10 = vld [vmem:[#allocation5 + $0x18] sm:$0xff]   ;;  %v382_v11 = vld [vmem:[#allocation2 + $0x30] sm:$0xff]   ;;  %p441_p3 = scmp.lt.s32.totalorder %s284_s23, %s284_s23 }
  0x2a   :  { %331 = vmatprep.subr.bf16.mxu0 %v468_v0  ;;  %351 = vmatprep.subr.bf16.mxu1 %v468_v0  ;;  %v388_v12 = vld [vmem:[#allocation5 + $0x20] sm:$0xff]   ;;  %v383_v13 = vld [vmem:[#allocation2 + $0x38] sm:$0xff]   ;;  %v389_v15 = vld [vmem:[#allocation5 + $0x28] sm:$0xff]  }
  0x2b   :  { %v50_v14 = vld [vmem:[%s546_s0] sm:$0x3]  ;;  %v390_v17 = vld [vmem:[#allocation5 + $0x30] sm:$0xff]   ;;  %v391_v18 = vld [vmem:[#allocation5 + $0x38] sm:$0xff]  }
  0x2c   :  { %v51_v16 = vpack.c.bf16 %v50_v14, %v50_v14  ;;  %v293_v19 = vld [vmem:[%s548_s2] ss:$0 sm:$0xff]  ;;  %s436_s2 = scalar_lea.vmem %s284_s23, 32 }
  0x2d   :  { %332 = vmatpush3.bf16.msra.mxu0 %v377_v2  ;;  %352 = vmatpush3.bf16.msra.mxu1 %v385_v6  ;;  %v302_v27 = vld [vmem:[%s550_s4] ss:$0 sm:$0xff]  ;;  %p437_p2 = scmp.ne.s32.totalorder %s284_s23, %s436_s2  ;;  %p442_p4 = scmp.lt.s32.totalorder %s436_s2, %s436_s2 }
  0x2e   :  { %333 = vmatprep.subr.bf16.mxu0 %v468_v0  ;;  %353 = vmatprep.subr.bf16.mxu1 %v468_v0 }
  0x2f   :  { %p443_p5 = por %p442_p4, %p441_p3 }
  0x31   :  { %334 = vmatpush3.bf16.msra.mxu0 %v378_v3  ;;  %354 = vmatpush3.bf16.msra.mxu1 %v386_v8  ;;  %p444_p6 = pnand %p443_p5, %p437_p2 }
  0x32   :  { %335 = vmatprep.subr.bf16.mxu0 %v468_v0  ;;  %355 = vmatprep.subr.bf16.mxu1 %v468_v0 }
  0x35   :  { %336 = vmatpush3.bf16.msra.mxu0 %v379_v5  ;;  %356 = vmatpush3.bf16.msra.mxu1 %v387_v10 }
  0x36   :  { %337 = vmatprep.subr.bf16.mxu0 %v468_v0  ;;  %357 = vmatprep.subr.bf16.mxu1 %v468_v0 }
  0x39   :  { %338 = vmatpush3.bf16.msra.mxu0 %v380_v7  ;;  %358 = vmatpush3.bf16.msra.mxu1 %v388_v12 }
  0x3a   :  { %339 = vmatprep.subr.bf16.mxu0 %v468_v0  ;;  %359 = vmatprep.subr.bf16.mxu1 %v468_v0 }
  0x3d   :  { %340 = vmatpush3.bf16.msra.mxu0 %v381_v9  ;;  %360 = vmatpush3.bf16.msra.mxu1 %v389_v15 }
  0x3e   :  { %341 = vmatprep.subr.bf16.mxu0 %v468_v0  ;;  %361 = vmatprep.subr.bf16.mxu1 %v468_v0 }
  0x41   :  { %342 = vmatpush3.bf16.msra.mxu0 %v382_v11  ;;  %362 = vmatpush3.bf16.msra.mxu1 %v390_v17 }
  0x42   :  { %343 = vmatprep.subr.bf16.mxu0 %v468_v0  ;;  %363 = vmatprep.subr.bf16.mxu1 %v468_v0 }
  0x45   :  { %344 = vmatpush3.bf16.msra.mxu0 %v383_v13  ;;  %364 = vmatpush3.bf16.msra.mxu1 %v391_v18 }
  0x48   :  { %346 = vmatmul.mubr.bf16.vlgmr.msra.gmra.mrb[0].mxu0 %v51_v16 }
 0x11b   :  { %v157_v20 = vpop.f32.mrb[0].mxu0 }
 0x11c   :  { %v158_v21 = vadd.f32 %v293_v19, %v157_v20  ;;  %v347_v22 = vpop.f32.mrb[1].mxu0 }
 0x11d   :  { %v160_v23 = vpop.f32.mrb[2].mxu0 }
 0x11e   :  { %v163_v24 = vmax.f32 %v158_v21, 0.0  ;;  %v348_v25 = vpop.f32.mrb[3].mxu0 }
 0x120   :  { %v164_v26 = vpack.c.bf16 %v163_v24, %v163_v24 }
 0x122   :  { %366 = vmatmul.mubr.bf16.vlgmr.msra.gmra.mrb[0].mxu1 %v164_v26 }
 0x1f5   :  { %v270_v28 = vpop.f32.mrb[0].mxu1 }
 0x1f6   :  { %v271_v29 = vadd.f32 %v302_v27, %v270_v28  ;;  %v367_v30 = vpop.f32.mrb[1].mxu1 }
 0x1f7   :  { %v273_v31 = vpop.f32.mrb[2].mxu1 }
 0x1f8   :  { %276 = vst [vmem:[#allocation7] sm:$0x3] %v271_v29  ;;  %v368_v32 = vpop.f32.mrb[3].mxu1 }
 0x1f9   :  { %447 = shalt.err (!%p444_p6)
}
 0x1fa   :  { %s448_s4 = scalar_lea.hbm %s551_s5, 32 }
 0x1fb   :  { %p449_p7 = scmp.ne.s32.totalorder %s551_s5, %s448_s4  ;;  %p452_p8 = scmp.lt.u32.totalorder %s448_s4, %s551_s5 }
 0x1fd   :  { %p454_p9 = pnand %p452_p8, %p449_p7 }
 0x1ff   :  { %457 = shalt.err (!%p454_p9)
}
 0x200   :  { %286 = dma.vmem_to_hbm [thread:$0]  %s284_s23, 32, %s551_s5, [#allocation4]  }
 0x201   :  { %462 = dma.done.wait [#allocation4], 32  }
 0x202   :  { %463 = vsyncadd [#allocation4], 4294967264 }
 0x203   :  { %290 = vsyncpa [#allocation3], 1 }
 0x204   :  { %291 = vsyncpa [#allocation6], 1 }
 0x205   :  { %292 = vsyncpa [#allocation4], 1 }

</bundles_post_ra>
